<compile_context>
chip_gen: v6e
topology: v6e:2x2x1
jax: 0.10.0
libtpu: 0.0.40
codegen_flags: <defaults>
</compile_context>

<pallas_src>
import functools

import jax
import jax.numpy as jnp
from jax.experimental import pallas as pl
from jax.experimental.pallas import tpu as pltpu


def _round_up(v, m):
    return ((v + m - 1) // m) * m


def _default_act_dtype():
    """bf16 hidden activations on chips with a bf16 VPU (v6e/v7x); f32 otherwise."""
    try:
        kind = jax.devices()[0].device_kind.lower()
    except Exception:
        return jnp.float32
    return jnp.bfloat16 if ("v6" in kind or "v7" in kind) else jnp.float32


def _choose_batch_tile(batch, batch_tile):
    """Rows per grid step.

    Small batches: one block equal to the full batch dim (legal block shape).
    Larger batches: target >= 2 grid steps so the "parallel" axis can shard
    across both TensorCores (v7x), capped at batch_tile so very large batches
    still amortize the ~0.35us per-grid-step overhead with big tiles.
    """
    if batch <= 8:
        return batch
    half = _round_up(pl.cdiv(batch, 2), 8)
    return max(8, min(batch_tile, half))


# ----------------------------------------------------------------------------
# Kernel
# ----------------------------------------------------------------------------
def _policy_kernel(x_ref, w_ref, b_ref, o_ref, *, layer_specs, act_dtype):
    """Fused MLP + softmax on one (tm, s_size) batch tile.

    x_ref : (tm, s_size)           f32/bf16  activation tile (real feature width)
    w_ref : (total_rows, f_max)    bf16      all weights stacked row-wise, (in, out)
    b_ref : (n_linear, 1, f_max)   f32       biases (last layer's padded cols = -1e30)
    o_ref : (tm, out_pad)          bf16/f32  softmax probs (padded cols store 0)

    layer_specs: tuple of (row_offset, k_rows, out_cols) per linear layer, where
    k_rows matches the current activation width (s_size for layer 0, previous
    layer's padded width afterwards).
    """
    n_linear = len(layer_specs)
    h = x_ref[...]                                   # (tm, s_size)

    for i, (row, k, dout) in enumerate(layer_specs):
        w = w_ref[row:row + k, :dout]                # static slice, bf16 (k, dout)
        b = b_ref[i][:, :dout]                       # f32 (1, dout)
        # bf16 x bf16 on the MXU, f32 accumulation; bias add / ReLU in f32.
        acc = jnp.dot(h.astype(w.dtype), w, preferred_element_type=jnp.float32) + b
        if i < n_linear - 1:
            acc = jnp.maximum(acc, 0.0)              # ReLU on hidden layers only
            h = acc.astype(act_dtype)                # bf16 on v6e/v7x, f32 on v5e
        else:
            h = acc                                  # logits stay f32 for softmax

    # Numerically-stable softmax over the feature axis (== torch dim=1).
    # Padded logit columns carry bias -1e30 (zero weight cols) -> exp() == 0.
    m = jnp.max(h, axis=-1, keepdims=True)
    e = jnp.exp(h - m)
    denom = jnp.sum(e, axis=-1, keepdims=True)
    inv = pl.reciprocal(denom, approx=True)          # EUP vrcp, otherwise-idle slot
    o_ref[...] = (e * inv).astype(o_ref.dtype)


# ----------------------------------------------------------------------------
# Parameter packing + wrapper
# ----------------------------------------------------------------------------
def pack_policy_params(params, a_size, param_dtype=jnp.bfloat16):
    """Pack per-layer (W_T (in,out), b (1,out)) into one weight slab + one bias slab.

    Layer-0 weight rows are padded only to a sublane multiple (8), NOT to 128,
    because x arrives with its real feature width.  Hidden/output layers use
    the previous layer's padded output width as their row count.  The padded
    columns of the LAST layer's bias are set to -1e30 so the softmax mask is
    free (padded weight columns are exactly zero by construction).

    Returns (w_slab (total_rows, f_max) param_dtype,
             b_slab (n_linear, 1, f_max) f32,
             layer_specs  tuple of (row_offset, k_rows, out_cols),
             layer_dims   tuple of real (in, out) dims, for cost estimation).
    """
    n = len(params)
    out_pads = [_round_up(w.shape[1], 128) for w, _ in params]
    f_max = max(out_pads)

    row_counts, k_used = [], []
    for i, (w, _) in enumerate(params):
        if i == 0:
            row_counts.append(_round_up(w.shape[0], 8))
            k_used.append(w.shape[0])            # real s_size (x is unpadded)
        else:
            row_counts.append(out_pads[i - 1])   # activation width from prev layer
            k_used.append(out_pads[i - 1])
    total_rows = sum(row_counts)

    w_slab = jnp.zeros((total_rows, f_max), param_dtype)
    b_slab = jnp.zeros((n, 1, f_max), jnp.float32)
    layer_specs = []
    row = 0
    for i, ((w, b), rows, k) in enumerate(zip(params, row_counts, k_used)):
        w_slab = w_slab.at[row:row + w.shape[0], :w.shape[1]].set(w.astype(param_dtype))
        b_slab = b_slab.at[i, 0, :b.shape[1]].set(b.reshape(-1).astype(jnp.float32))
        layer_specs.append((row, k, out_pads[i]))
        row += rows

    # Fold the padded-logit mask into the last layer's bias.
    b_slab = b_slab.at[n - 1, 0, a_size:].set(-1e30)

    layer_dims = tuple((w.shape[0], w.shape[1]) for w, _ in params)
    return w_slab, b_slab, tuple(layer_specs), layer_dims


def policy_forward(x, w_slab, b_slab, layer_specs, layer_dims, a_size, *,
                   batch_tile=512, out_dtype=jnp.bfloat16, act_dtype=None):
    """x: (batch, s_size) f32 or bf16 -> (batch, a_size) softmax probabilities.

    Any batch size works (no padding is materialized); large batches are tiled
    along a "parallel" batch grid axis.  bf16 input halves the input DMA.
    """
    batch, s_size = x.shape
    assert s_size == layer_dims[0][0], "x feature width must match layer-0 fan_in"
    out_pad = layer_specs[-1][2]
    if act_dtype is None:
        act_dtype = _default_act_dtype()

    tm = _choose_batch_tile(batch, batch_tile)
    grid = (pl.cdiv(batch, tm),)

    kernel = functools.partial(
        _policy_kernel, layer_specs=layer_specs, act_dtype=act_dtype)

    # Advisory cost from REAL dims (not padded), so XLA scheduling isn't skewed.
    flops = 2 * batch * sum(din * dout for din, dout in layer_dims)
    bytes_accessed = (
        batch * s_size * jnp.dtype(x.dtype).itemsize
        + w_slab.size * jnp.dtype(w_slab.dtype).itemsize
        + b_slab.size * 4
        + batch * out_pad * jnp.dtype(out_dtype).itemsize)
    cost = pl.CostEstimate(
        flops=int(flops),
        transcendentals=int(batch * (a_size + 1)),   # exp per real logit + recip/row
        bytes_accessed=int(bytes_accessed))

    out = pl.pallas_call(
        kernel,
        out_shape=jax.ShapeDtypeStruct((batch, out_pad), out_dtype),
        grid_spec=pltpu.PrefetchScalarGridSpec(
            num_scalar_prefetch=0,
            grid=grid,
            in_specs=[
                # x at its REAL feature width (block last dim == full array dim).
                pl.BlockSpec((tm, s_size), lambda i: (i, 0)),
                pl.BlockSpec(w_slab.shape, lambda i: (0, 0)),       # resident W slab
                pl.BlockSpec(b_slab.shape, lambda i: (0, 0, 0)),    # resident biases
            ],
            out_specs=pl.BlockSpec((tm, out_pad), lambda i: (i, 0)),  # lane-dense out
        ),
        compiler_params=pltpu.CompilerParams(
            dimension_semantics=("parallel",),       # shards across TCs on v7x
            vmem_limit_bytes=32 * 1024 * 1024,       # safe on v5e/v6e and v7x (64 MiB)
        ),
        cost_estimate=cost,
    )(x, w_slab, b_slab)

    # Ragged final batch block: OOB rows were never written; slice real logits.
    return out[:, :a_size]


# ----------------------------------------------------------------------------
# Init + references
# ----------------------------------------------------------------------------
def init_policy_params(key, s_size, a_size, h_size, n_layers):
    """nn.Linear-style init (uniform +-1/sqrt(fan_in)); W_T is (in, out), b is (1, out)."""
    dims = [s_size] + [h_size] * (n_layers - 1) + [a_size]
    params = []
    for i in range(len(dims) - 1):
        fan_in, fan_out = dims[i], dims[i + 1]
        key, kw, kb = jax.random.split(key, 3)
        bound = 1.0 / jnp.sqrt(fan_in)
        w_t = jax.random.uniform(kw, (fan_in, fan_out), jnp.float32, -bound, bound)
        b = jax.random.uniform(kb, (1, fan_out), jnp.float32, -bound, bound)
        params.append((w_t, b))
    return params


def _reference_f32(x, params):
    h = x.astype(jnp.float32)
    for i, (w_t, b) in enumerate(params):
        h = h @ w_t + b
        if i < len(params) - 1:
            h = jnp.maximum(h, 0.0)
    return jax.nn.softmax(h, axis=1)


def _reference_bf16(x, params):
    # Mirrors the kernel's mixed precision (bf16 MXU operands, f32 accum/softmax).
    h = x.astype(jnp.float32)
    for i, (w_t, b) in enumerate(params):
        h = jnp.dot(h.astype(jnp.bfloat16), w_t.astype(jnp.bfloat16),
                    preferred_element_type=jnp.float32) + b
        if i < len(params) - 1:
            h = jnp.maximum(h, 0.0)
    return jax.nn.softmax(h, axis=1)


# TODO(synk): Policy.act() (Categorical sampling / log_prob) is host-side control
# logic on top of forward(); it is intentionally not part of the kernel.

if __name__ == "__main__":
    # Small shapes consistent with the module: Policy(s_size=8, a_size=4,
    # h_size=32, n_layers=3) applied to a batch of 2 states.
    s_size, a_size, h_size, n_layers = 8, 4, 32, 3
    batch = 2

    key = jax.random.PRNGKey(0)
    kx, kp, kx2 = jax.random.split(key, 3)
    x = jax.random.normal(kx, (batch, s_size), dtype=jnp.float32)
    params = init_policy_params(kp, s_size, a_size, h_size, n_layers)

    # Pack once (this is the state that would live on-device between env steps).
    w_slab, b_slab, layer_specs, layer_dims = pack_policy_params(
        params, a_size, jnp.bfloat16)

    probs = jax.block_until_ready(
        policy_forward(x, w_slab, b_slab, layer_specs, layer_dims, a_size))
    probs_f32 = probs.astype(jnp.float32)

    # sanity: valid probability distribution per row (bf16 output + approx
    # reciprocal -> sums to 1 only within ~1e-2; fine for Categorical sampling).
    assert probs.shape == (batch, a_size)
    assert bool(jnp.all(jnp.isfinite(probs_f32)))
    assert bool(jnp.allclose(jnp.sum(probs_f32, axis=1), 1.0, atol=2e-2))

    # matches a mixed-precision JAX reference tightly, and the full-f32
    # reference within bf16 rounding.
    ref_bf16 = _reference_bf16(x, params)
    ref_f32 = _reference_f32(x, params)
    assert bool(jnp.allclose(probs_f32, ref_bf16, atol=1e-2, rtol=1e-2))
    assert bool(jnp.allclose(probs_f32, ref_f32, atol=3e-2, rtol=3e-2))

    # Larger, non-tile-aligned batch exercises the tiled/parallel grid path with
    # bf16 input (how the kernel should be used: many states per call).
    batch2 = 272
    x2 = jax.random.normal(kx2, (batch2, s_size), dtype=jnp.float32)
    x2_bf16 = x2.astype(jnp.bfloat16)
    probs2 = jax.block_until_ready(
        policy_forward(x2_bf16, w_slab, b_slab, layer_specs, layer_dims, a_size))
    probs2_f32 = probs2.astype(jnp.float32)
    ref2 = _reference_bf16(x2_bf16.astype(jnp.float32), params)
    assert probs2.shape == (batch2, a_size)
    assert bool(jnp.all(jnp.isfinite(probs2_f32)))
    assert bool(jnp.allclose(jnp.sum(probs2_f32, axis=1), 1.0, atol=2e-2))
    assert bool(jnp.allclose(probs2_f32, ref2, atol=1e-2, rtol=1e-2))

    # f32-input path on the large batch as well (kernel casts operands in VMEM).
    probs3 = jax.block_until_ready(
        policy_forward(x2, w_slab, b_slab, layer_specs, layer_dims, a_size))
    assert bool(jnp.allclose(probs3.astype(jnp.float32),
                             _reference_bf16(x2, params), atol=1e-2, rtol=1e-2))

    print("KERNEL_OK")
</pallas_src>

<mosaic_0001>
module attributes {stable_mosaic.version = 11 : i64} {
  func.func @_policy_kernel(%arg0: i32, %arg1: memref<2x8xf32, #tpu.memory_space<vmem>>, %arg2: memref<264x128xbf16, #tpu.memory_space<vmem>>, %arg3: memref<3x1x128xf32, #tpu.memory_space<vmem>>, %arg4: memref<2x128xbf16, #tpu.memory_space<vmem>>) attributes {dimension_semantics = [#tpu.dimension_semantics<parallel>], iteration_bounds = array<i64: 1>, scalar_prefetch = 0 : i64, scratch_operands = 0 : i64, tpu.core_type = #tpu.core_type<tc>, window_params = [{transform_indices = @transform_0, window_bounds = array<i64: 2, 8>}, {pipeline_mode = #tpu.pipeline_mode<synchronous>, transform_indices = @transform_1, window_bounds = array<i64: 264, 128>}, {pipeline_mode = #tpu.pipeline_mode<synchronous>, transform_indices = @transform_2, window_bounds = array<i64: 3, 1, 128>}, {transform_indices = @transform_3, window_bounds = array<i64: 2, 128>}]} {
    %c0 = arith.constant 0 : index
    %c0_0 = arith.constant 0 : index
    %0 = vector.load %arg1[%c0, %c0_0] : memref<2x8xf32, #tpu.memory_space<vmem>>, vector<2x8xf32>
    %c0_1 = arith.constant 0 : index
    %c0_2 = arith.constant 0 : index
    %1 = vector.load %arg2[%c0_1, %c0_2] : memref<264x128xbf16, #tpu.memory_space<vmem>>, vector<8x128xbf16>
    %c0_3 = arith.constant 0 : index
    %c0_4 = arith.constant 0 : index
    %c0_5 = arith.constant 0 : index
    %2 = vector.load %arg3[%c0_3, %c0_4, %c0_5] : memref<3x1x128xf32, #tpu.memory_space<vmem>>, vector<1x1x128xf32>
    %3 = vector.shape_cast %2 : vector<1x1x128xf32> to vector<1x128xf32>
    %4 = arith.truncf %0 : vector<2x8xf32> to vector<2x8xbf16>
    %cst = arith.constant dense<0.000000e+00> : vector<2x128xf32>
    %5 = tpu.matmul %4, %1, %cst {dimension_numbers = #tpu.dot_dimension_numbers<[1], [0], [0], [1], [0, 0, 1, 1], [], []>} : vector<2x8xbf16>, vector<8x128xbf16>, vector<2x128xf32> -> vector<2x128xf32>
    %6 = vector.broadcast %3 : vector<1x128xf32> to vector<2x128xf32>
    %7 = arith.addf %5, %6 : vector<2x128xf32>
    %cst_6 = arith.constant 0.000000e+00 : f32
    %8 = vector.broadcast %cst_6 : f32 to vector<2x128xf32>
    %9 = arith.maximumf %7, %8 : vector<2x128xf32>
    %c8 = arith.constant 8 : index
    %c0_7 = arith.constant 0 : index
    %10 = vector.load %arg2[%c8, %c0_7] : memref<264x128xbf16, #tpu.memory_space<vmem>>, vector<128x128xbf16>
    %c1 = arith.constant 1 : index
    %c0_8 = arith.constant 0 : index
    %c0_9 = arith.constant 0 : index
    %11 = vector.load %arg3[%c1, %c0_8, %c0_9] : memref<3x1x128xf32, #tpu.memory_space<vmem>>, vector<1x1x128xf32>
    %12 = vector.shape_cast %11 : vector<1x1x128xf32> to vector<1x128xf32>
    %13 = arith.truncf %9 : vector<2x128xf32> to vector<2x128xbf16>
    %cst_10 = arith.constant dense<0.000000e+00> : vector<2x128xf32>
    %14 = tpu.matmul %13, %10, %cst_10 {dimension_numbers = #tpu.dot_dimension_numbers<[1], [0], [0], [1], [0, 0, 1, 1], [], []>} : vector<2x128xbf16>, vector<128x128xbf16>, vector<2x128xf32> -> vector<2x128xf32>
    %15 = vector.broadcast %12 : vector<1x128xf32> to vector<2x128xf32>
    %16 = arith.addf %14, %15 : vector<2x128xf32>
    %cst_11 = arith.constant 0.000000e+00 : f32
    %17 = vector.broadcast %cst_11 : f32 to vector<2x128xf32>
    %18 = arith.maximumf %16, %17 : vector<2x128xf32>
    %c136 = arith.constant 136 : index
    %c0_12 = arith.constant 0 : index
    %19 = vector.load %arg2[%c136, %c0_12] : memref<264x128xbf16, #tpu.memory_space<vmem>>, vector<128x128xbf16>
    %c2 = arith.constant 2 : index
    %c0_13 = arith.constant 0 : index
    %c0_14 = arith.constant 0 : index
    %20 = vector.load %arg3[%c2, %c0_13, %c0_14] : memref<3x1x128xf32, #tpu.memory_space<vmem>>, vector<1x1x128xf32>
    %21 = vector.shape_cast %20 : vector<1x1x128xf32> to vector<1x128xf32>
    %22 = arith.truncf %18 : vector<2x128xf32> to vector<2x128xbf16>
    %cst_15 = arith.constant dense<0.000000e+00> : vector<2x128xf32>
    %23 = tpu.matmul %22, %19, %cst_15 {dimension_numbers = #tpu.dot_dimension_numbers<[1], [0], [0], [1], [0, 0, 1, 1], [], []>} : vector<2x128xbf16>, vector<128x128xbf16>, vector<2x128xf32> -> vector<2x128xf32>
    %24 = vector.broadcast %21 : vector<1x128xf32> to vector<2x128xf32>
    %25 = arith.addf %23, %24 : vector<2x128xf32>
    %cst_16 = arith.constant dense<0xFF800000> : vector<2xf32>
    %26 = vector.multi_reduction <maximumf>, %25, %cst_16 [1] : vector<2x128xf32> to vector<2xf32>
    %27 = vector.shape_cast %26 : vector<2xf32> to vector<2x1xf32>
    %28 = vector.broadcast %27 : vector<2x1xf32> to vector<2x128xf32>
    %29 = arith.subf %25, %28 : vector<2x128xf32>
    %30 = math.exp %29 : vector<2x128xf32>
    %cst_17 = arith.constant dense<0.000000e+00> : vector<2xf32>
    %31 = vector.multi_reduction <add>, %30, %cst_17 [1] : vector<2x128xf32> to vector<2xf32>
    %32 = vector.shape_cast %31 : vector<2xf32> to vector<2x1xf32>
    %33 = tpu.reciprocal %32 {approx = true} : vector<2x1xf32> -> vector<2x1xf32>
    %34 = vector.broadcast %33 : vector<2x1xf32> to vector<2x128xf32>
    %35 = arith.mulf %30, %34 : vector<2x128xf32>
    %36 = arith.truncf %35 : vector<2x128xf32> to vector<2x128xbf16>
    %c0_18 = arith.constant 0 : index
    %c0_19 = arith.constant 0 : index
    %37 = vector.load %arg4[%c0_18, %c0_19] : memref<2x128xbf16, #tpu.memory_space<vmem>>, vector<2x128xbf16>
    tpu.vector_store %arg4[%c0_18, %c0_19], %36 {strides = array<i32>} : memref<2x128xbf16, #tpu.memory_space<vmem>>, vector<2x128xbf16>,
    return
  }
  func.func @transform_0(%arg0: i32) -> (i32, i32) {
    %c0_i32 = arith.constant 0 : i32
    %c0_i32_0 = arith.constant 0 : i32
    return %arg0, %c0_i32 : i32, i32
  }
  func.func @transform_1(%arg0: i32) -> (i32, i32) {
    %c0_i32 = arith.constant 0 : i32
    %c0_i32_0 = arith.constant 0 : i32
    %c0_i32_1 = arith.constant 0 : i32
    return %c0_i32, %c0_i32_0 : i32, i32
  }
  func.func @transform_2(%arg0: i32) -> (i32, i32, i32) {
    %c0_i32 = arith.constant 0 : i32
    %c0_i32_0 = arith.constant 0 : i32
    %c0_i32_1 = arith.constant 0 : i32
    %c0_i32_2 = arith.constant 0 : i32
    return %c0_i32, %c0_i32_0, %c0_i32_1 : i32, i32, i32
  }
  func.func @transform_3(%arg0: i32) -> (i32, i32) {
    %c0_i32 = arith.constant 0 : i32
    %c0_i32_0 = arith.constant 0 : i32
    return %arg0, %c0_i32 : i32, i32
  }
}

</mosaic_0001>

<bundles_post_ra>
// kernel: tpu_custom_call.1
= control target key start
LH: loop header
LB: loop body
LE: loop exit
PB: predicated region body
PF: predicated region fallthrough
CT: control target
= control target key end

     0   :  { %8 = vsyncpa [#allocation3], 0  ;;  %s607_s0 = inlined_call_operand.hbm [shape: f32[2,8], index: 0, kind: input, shape index: {}]   ;;  %s608_s1 = inlined_call_operand.hbm [shape: bf16[264,128], index: 1, kind: input, shape index: {}]   ;;  %s609_s2 = inlined_call_operand.vmem [shape: f32[3,1,128], index: 2, kind: input, shape index: {}]   ;;  %s610_s3 = inlined_call_operand.hbm [shape: bf16[2,128], index: 3, kind: output, shape index: {}]  }
   0x1   :  { %9 = vsyncpa [#allocation6], 0 }
   0x2   :  { %10 = vsyncpa [#allocation4], 0  ;;  %s539_s12 = smov [#allocation2]   ;;  %s540_s14 = smov [#allocation5]  }
   0x3   :  { %s17_s13 = sshll.u32 %s539_s12, 4  ;;  %s26_s15 = sshll.u32 %s540_s14, 4  ;;  %s18_s13 = int_to_ptr.vmem [resolvable:$true] %s17_s13  ;;  %s27_s15 = int_to_ptr.vmem [resolvable:$true] %s26_s15 }
   0x4   :  { %s481_s16 = scalar_lea.vmem %s18_s13, 32  ;;  %p486_p1 = scmp.lt.s32.totalorder %s18_s13, %s18_s13 }
   0x5   :  { %p482_p0 = scmp.ne.s32.totalorder %s18_s13, %s481_s16  ;;  %p487_p2 = scmp.lt.s32.totalorder %s481_s16, %s481_s16 }
   0x7   :  { %p488_p3 = por %p487_p2, %p486_p1 }
   0x9   :  { %p489_p4 = pnand %p488_p3, %p482_p0 }
   0xb   :  { %492 = shalt.err (!%p489_p4)
}
   0xc   :  { %20 = dma.hbm_to_vmem [thread:$0]  %s607_s0, 32, %s18_s13, [#allocation3]  }
   0xd   :  { %s501_s19 = scalar_lea.vmem %s27_s15, 2112  ;;  %p506_p6 = scmp.lt.s32.totalorder %s27_s15, %s27_s15 }
   0xe   :  { %p502_p5 = scmp.ne.s32.totalorder %s27_s15, %s501_s19  ;;  %p507_p7 = scmp.lt.s32.totalorder %s501_s19, %s501_s19 }
  0x10   :  { %p508_p8 = por %p507_p7, %p506_p6 }
  0x12   :  { %p509_p9 = pnand %p508_p8, %p502_p5 }
  0x14   :  { %512 = shalt.err (!%p509_p9)
}
  0x15   :  { %s541_s20 = smov 64   ;;  %s542_s21 = smov 4  }
  0x16   :  { %32 = dma.hbm_to_vmem [thread:$0]  %s608_s1, 2112, %s27_s15, [#allocation6], %s541_s20, %s541_s20, %s542_s21  }
  0x17   :  { %533 = dma.done.wait [#allocation3], 32  }
  0x18   :  { %534 = vsyncadd [#allocation3], 4294967264 }
  0x19   :  { %535 = dma.done.wait [#allocation6], 2112  }
  0x1a   :  { %536 = vsyncadd [#allocation6], 4294965184  ;;  %v543_v0 = vmov 0.0   ;;  %vm544_vm0 = vmmov 0   ;;  %vm56_vm1 = vcmask 1043456   ;;  %v453_v5 = vld [vmem:[#allocation5 + $0x3c] sm:$0xff]  }
  0x1b   :  { %400 = vmatprep.subr.bf16.mxu0 %v543_v0  ;;  %402 = vmatprep.mubr.msk.bf16.mxu0 %vm544_vm0, %v543_v0  ;;  %v43_v1 = vld [vmem:[#allocation5] sm:$0xf]  ;;  %v42_v2 = vld [vmem:[#allocation2] sm:$0x3]  ;;  %vm52_vm2 = vcmask 64512   ;;  %v454_v6 = vld [vmem:[#allocation5 + $0x34] sm:$0xff]  }
  0x1c   :  { %406 = vmatprep.subr.bf16.mxu1 %v543_v0  ;;  %422 = vmatprep.mubr.msk.bf16.mxu1 %vm544_vm0, %v543_v0  ;;  %v58_v3 = vsel %vm56_vm1, %v43_v1, 0  ;;  %v45_v4 = vpack.c.bf16 %v42_v2, %v42_v2  ;;  %v455_v7 = vld [vmem:[#allocation5 + $0x2c] sm:$0xff]   ;;  %v456_v8 = vld [vmem:[#allocation5 + $0x24] sm:$0xff]   ;;  %v457_v9 = vld [vmem:[#allocation5 + $0x1c] sm:$0xff]   ;;  %vm328_vm3 = vcmask 1041408   ;;  %s545_s28 = smov [#allocation7]  }
  0x1d   :  { %401 = vmatpush3.bf16.msra.mxu0 %v58_v3  ;;  %407 = vmatpush3.bf16.msra.mxu1 %v453_v5  ;;  %v458_v10 = vld [vmem:[#allocation5 + $0x14] sm:$0xff]   ;;  %v459_v11 = vld [vmem:[#allocation5 + $0xc] sm:$0xff]   ;;  %v460_v12 = vld [vmem:[#allocation5 + $0x4] sm:$0xff]  }
  0x1e   :  { %426 = vmatprep.subr.bf16.mxu0 %v543_v0  ;;  %408 = vmatprep.subr.bf16.mxu1 %v543_v0  ;;  %v461_v13 = vld [vmem:[#allocation5 + $0x7c] sm:$0xff]   ;;  %v462_v14 = vld [vmem:[#allocation5 + $0x74] sm:$0xff]   ;;  %v463_v15 = vld [vmem:[#allocation5 + $0x6c] sm:$0xff]  }
  0x1f   :  { %v464_v16 = vld [vmem:[#allocation5 + $0x64] sm:$0xff]   ;;  %v465_v17 = vld [vmem:[#allocation5 + $0x5c] sm:$0xff]   ;;  %v466_v18 = vld [vmem:[#allocation5 + $0x54] sm:$0xff]  }
  0x20   :  { %403 = vmatmul.mubr.msk.bf16.vlgmr.msra.gmra.mxu0 %vm52_vm2, %v45_v4  ;;  %v358_v19 = vld [vmem:[%s609_s2] ss:$0 sm:$0xff]  ;;  %v467_v27 = vld [vmem:[#allocation5 + $0x4c] sm:$0xff]   ;;  %v468_v28 = vld [vmem:[#allocation5 + $0x44] sm:$0xff]  }
  0x21   :  { %442 = vmatprep.mubr.msk.bf16.mxu0 %vm544_vm0, %v543_v0  ;;  %409 = vmatpush3.bf16.msra.mxu1 %v454_v6  ;;  %v361_v29 = vld [vmem:[%s609_s2 + $0x1] ss:$0 sm:$0xff]  ;;  %v371_v37 = vld [vmem:[%s609_s2 + $0x2] ss:$0 sm:$0xff]  ;;  %s348_s2 = sshll.u32 %s545_s28, 4  ;;  %s349_s2 = int_to_ptr.vmem [resolvable:$true] %s348_s2 }
  0x22   :  { %410 = vmatprep.subr.bf16.mxu1 %v543_v0  ;;  %427 = vmatpush3.bf16.msra.mxu0 %v461_v13  ;;  %s513_s29 = scalar_lea.vmem %s349_s2, 16  ;;  %s517_s30 = scalar_lea.vmem %s349_s2, 32 }
  0x23   :  { %428 = vmatprep.subr.bf16.mxu0 %v543_v0  ;;  %p514_p10 = scmp.ne.s32.totalorder %s349_s2, %s513_s29  ;;  %p518_p11 = scmp.lt.s32.totalorder %s349_s2, %s349_s2 }
  0x24   :  { %p519_p12 = scmp.lt.s32.totalorder %s517_s30, %s513_s29 }
  0x25   :  { %411 = vmatpush3.bf16.msra.mxu1 %v455_v7 }
  0x26   :  { %412 = vmatprep.subr.bf16.mxu1 %v543_v0  ;;  %429 = vmatpush3.bf16.msra.mxu0 %v462_v14  ;;  %p520_p13 = por %p519_p12, %p518_p11 }
  0x27   :  { %430 = vmatprep.subr.bf16.mxu0 %v543_v0 }
  0x28   :  { %p521_p0 = pnand %p520_p13, %p514_p10 }
  0x29   :  { %413 = vmatpush3.bf16.msra.mxu1 %v456_v8 }
  0x2a   :  { %414 = vmatprep.subr.bf16.mxu1 %v543_v0  ;;  %431 = vmatpush3.bf16.msra.mxu0 %v463_v15 }
  0x2b   :  { %432 = vmatprep.subr.bf16.mxu0 %v543_v0 }
  0x2d   :  { %415 = vmatpush3.bf16.msra.mxu1 %v457_v9 }
  0x2e   :  { %416 = vmatprep.subr.bf16.mxu1 %v543_v0  ;;  %433 = vmatpush3.bf16.msra.mxu0 %v464_v16 }
  0x2f   :  { %434 = vmatprep.subr.bf16.mxu0 %v543_v0 }
  0x31   :  { %417 = vmatpush3.bf16.msra.mxu1 %v458_v10 }
  0x32   :  { %418 = vmatprep.subr.bf16.mxu1 %v543_v0  ;;  %435 = vmatpush3.bf16.msra.mxu0 %v465_v17 }
  0x33   :  { %436 = vmatprep.subr.bf16.mxu0 %v543_v0 }
  0x35   :  { %419 = vmatpush3.bf16.msra.mxu1 %v459_v11 }
  0x36   :  { %420 = vmatprep.subr.bf16.mxu1 %v543_v0  ;;  %437 = vmatpush3.bf16.msra.mxu0 %v466_v18 }
  0x37   :  { %438 = vmatprep.subr.bf16.mxu0 %v543_v0 }
  0x39   :  { %421 = vmatpush3.bf16.msra.mxu1 %v460_v12 }
  0x3a   :  { %439 = vmatpush3.bf16.msra.mxu0 %v467_v27 }
  0x3b   :  { %440 = vmatprep.subr.bf16.mxu0 %v543_v0 }
  0x3e   :  { %441 = vmatpush3.bf16.msra.mxu0 %v468_v28 }
  0xe0   :  { %v94_v20 = vpop.f32.mrf.mxu0 }
  0xe1   :  { %v95_v21 = vadd.f32 %v358_v19, %v94_v20 }
  0xe2   :  { %v404_v22 = vpop.f32.mrf.mxu0 }
  0xe3   :  { %v100_v23 = vmax.f32 %v95_v21, 0.0 }
  0xe4   :  { %v97_v24 = vpop.f32.mrf.mxu0 }
  0xe5   :  { %v119_v25 = vpack.c.bf16 %v100_v23, %v100_v23 }
  0xe6   :  { %v405_v26 = vpop.f32.mrf.mxu0 }
  0xe7   :  { %423 = vmatmul.mubr.bf16.vlgmr.msra.gmra.mxu1 %v119_v25 }
 0x1a7   :  { %v208_v30 = vpop.f32.mrf.mxu1 }
 0x1a8   :  { %v209_v31 = vadd.f32 %v361_v29, %v208_v30 }
 0x1a9   :  { %v424_v32 = vpop.f32.mrf.mxu1 }
 0x1aa   :  { %v214_v33 = vmax.f32 %v209_v31, 0.0 }
 0x1ab   :  { %v211_v34 = vpop.f32.mrf.mxu1 }
 0x1ac   :  { %v233_v35 = vpack.c.bf16 %v214_v33, %v214_v33 }
 0x1ad   :  { %v425_v36 = vpop.f32.mrf.mxu1 }
 0x1ae   :  { %443 = vmatmul.mubr.bf16.vlgmr.msra.gmra.mxu0 %v233_v35 }
 0x26e   :  { %v322_v38 = vpop.f32.mrf.mxu0 }
 0x26f   :  { %v323_v39 = vadd.f32 %v371_v37, %v322_v38 }
 0x270   :  { %v444_v40 = vpop.f32.mrf.mxu0 }
 0x271   :  { %v329_v41 = vsel %vm328_vm3, %v323_v39, -inf }
 0x272   :  { %330 = vmax.xlane.f32.xlu0 %v329_v41  ;;  %v325_v42 = vpop.f32.mrf.mxu0 }
 0x274   :  { %v445_v43 = vpop.f32.mrf.mxu0 }
 0x2fb   :  { %v331_v44 = vpop.xlane.xlu0 %330 }
 0x2fc   :  { %v332_v45 = vsub.f32 %v323_v39, %v331_v44 }
 0x2fe   :  { %v333_v46 = vmul.f32 1.442695, %v332_v45 }
 0x300   :  { %469 = vpow2.f32 %v333_v46 }
 0x30d   :  { %v470_v47 = vpop.eup %469 }
 0x30e   :  { %v335_v48 = vsel %vm328_vm3, %v470_v47, 0.0 }
 0x30f   :  { %336 = vadd.xlane.f32.xlu0 %v335_v48 }
 0x398   :  { %v337_v49 = vpop.xlane.xlu0 %336 }
 0x399   :  { %471 = vrcp.f32 %v337_v49 }
 0x3a6   :  { %v472_v50 = vpop.eup %471 }
 0x3a7   :  { %v339_v51 = vmul.f32 %v472_v50, %v470_v47 }
 0x3a9   :  { %v340_v52 = vpack.c.bf16 %v339_v51, %v339_v51 }
 0x3ab   :  { %341 = vst [vmem:[#allocation7] sm:$0x1] %v340_v52 }
 0x3ac   :  { %524 = shalt.err (!%p521_p0)
}
 0x3ad   :  { %351 = dma.vmem_to_hbm [thread:$0]  %s349_s2, 16, %s610_s3, [#allocation4]  }
 0x3ae   :  { %537 = dma.done.wait [#allocation4], 16  }
 0x3af   :  { %538 = vsyncadd [#allocation4], 4294967280 }
 0x3b0   :  { %355 = vsyncpa [#allocation3], 1 }
 0x3b1   :  { %356 = vsyncpa [#allocation6], 1 }
 0x3b2   :  { %357 = vsyncpa [#allocation4], 1 }

</bundles_post_ra>
